<compile_context>
chip_gen: v6e
topology: v6e:2x2x1
jax: 0.10.0
libtpu: 0.0.40
codegen_flags: <defaults>
</compile_context>

<pallas_src>
import jax
import jax.numpy as jnp
from jax.experimental import pallas as pl
from jax.experimental.pallas import tpu as pltpu


def _windowed_channel_sumsq(x_sq):
    """sum_{k=c-2..c+2, 0<=k<C} x_sq[k, :] for every channel c (x_sq: (C, THW))."""
    C = x_sq.shape[0]
    if C % 8 == 0:
        # Roll path: 5-tap stencil via XLU sublane rotations + channel mask.
        # No (C+4, THW) padded copy is materialized.  Gated on C % 8 == 0 so
        # the rotated (sublane) dimension is native-tile aligned.
        ch = jax.lax.broadcasted_iota(jnp.int32, x_sq.shape, 0)
        sumsq = x_sq
        for off in (-2, -1, 1, 2):
            if C <= abs(off):
                continue  # no channel has a valid neighbor at this offset
            rolled = pltpu.roll(x_sq, shift=(-off) % C, axis=0)  # rolled[c] = x_sq[c+off mod C]
            valid = (ch >= -off) if off < 0 else (ch <= C - 1 - off)
            sumsq = sumsq + jnp.where(valid, rolled, 0.0)
        return sumsq
    # Fallback for small / unaligned C (e.g. C=4): zero-pad channels and take
    # five static sublane-shifted slices -- exact f32 adds on the VPU.
    pad2 = jnp.zeros((2,) + x_sq.shape[1:], x_sq.dtype)
    xp = jnp.concatenate([pad2, x_sq, pad2], axis=0)          # (C+4, THW)
    return (xp[0:C] + xp[1:C + 1] + xp[2:C + 2]
            + xp[3:C + 3] + xp[4:C + 4])


def lrn_kernel(x_ref, o_ref):
    # Block: (1, C, THW) float32.  The last spatial block may be ragged; its
    # out-of-bounds lanes hold undefined data, but since the stencil only mixes
    # channels (sublanes), they only feed the matching out-of-bounds output
    # lanes, whose stores Pallas masks off.  Do not add a *spatial* stencil
    # without revisiting this.
    x = x_ref[0]                                   # (C, THW)
    sumsq = _windowed_channel_sumsq(x * x)

    # d ** -0.75 == rsqrt(d) * sqrt(rsqrt(d))  (EUP ops instead of pow + div).
    d = 2.0 + 0.0001 * sumsq
    inv = jax.lax.rsqrt(d)
    o_ref[0] = (x * (inv * jnp.sqrt(inv))).astype(o_ref.dtype)


def _round_up(v, m):
    return (v + m - 1) // m * m


def lrn_pallas(x, *, block_bytes=4 << 20):
    """x: (N, C, H, W) float32 -> (N, C, H, W) float32."""
    N, C, H, W = x.shape
    HW = H * W
    itemsize = jnp.dtype(x.dtype).itemsize

    # Lane-dense spatial tiles sized by byte budget (multiple of 128 lanes).
    max_lanes = max(128, (block_bytes // (itemsize * C)) // 128 * 128)
    THW = min(max_lanes, _round_up(HW, 128))
    if N == 1:
        # Megacore (v7x: 2 TensorCores): make sure at least one parallel grid
        # axis has >= 2 steps when the batch axis cannot provide them.
        half = _round_up(pl.cdiv(HW, 2), 128)
        if 128 <= half < THW:
            THW = half
    n_hw = pl.cdiv(HW, THW)           # ragged last block handled by Pallas

    blk_bytes = C * THW * itemsize
    # 2x(in) + 2x(out) pipeline buffers + ~5-6 block-sized in-kernel temps.
    vmem_limit = min(48 << 20, max(32 << 20, 10 * blk_bytes + (4 << 20)))

    # Metadata-only reshape: no HBM traffic, no padding round-trip.
    x2d = x.reshape(N, C, HW)

    # TODO(synk): for C < 8 only part of each vreg's sublanes carries data;
    # folding spatial into the sublane axis would fix that but complicates the
    # channel stencil -- left as-is since the kernel is HBM-bound.

    out = pl.pallas_call(
        lrn_kernel,
        out_shape=jax.ShapeDtypeStruct((N, C, HW), x.dtype),
        grid_spec=pltpu.PrefetchScalarGridSpec(
            num_scalar_prefetch=0,
            grid=(N, n_hw),
            in_specs=[pl.BlockSpec((1, C, THW), lambda n, j: (n, 0, j))],
            out_specs=pl.BlockSpec((1, C, THW), lambda n, j: (n, 0, j)),
        ),
        compiler_params=pltpu.CompilerParams(
            dimension_semantics=("parallel", "parallel"),
            vmem_limit_bytes=vmem_limit,
        ),
    )(x2d)

    return out.reshape(N, C, H, W)


def lrn_reference(x):
    # Pure-JAX reference mirroring the PyTorch module.
    N, C, H, W = x.shape
    x_sq = x ** 2
    pad = jnp.zeros((N, 2, H, W), dtype=x.dtype)
    xp = jnp.concatenate([pad, x_sq, pad], axis=1)            # (N, C+4, H, W)
    sumsq = sum(xp[:, k:k + C] for k in range(5))             # (N, C, H, W)
    return x / (2.0 + 0.0001 * sumsq) ** 0.75


if __name__ == "__main__":
    key = jax.random.PRNGKey(0)
    N, C, H, W = 2, 4, 16, 16
    x = jax.random.normal(key, (N, C, H, W), dtype=jnp.float32)

    out = jax.block_until_ready(lrn_pallas(x))

    ref = lrn_reference(x)
    assert out.shape == (N, C, H, W)
    assert jnp.allclose(out, ref, atol=1e-5, rtol=1e-5), "mismatch vs reference"

    print("KERNEL_OK")
</pallas_src>

<mosaic_0001>
module attributes {stable_mosaic.version = 11 : i64} {
  func.func @lrn_kernel(%arg0: i32, %arg1: i32, %arg2: memref<1x4x256xf32, #tpu.memory_space<vmem>>, %arg3: memref<1x4x256xf32, #tpu.memory_space<vmem>>) attributes {dimension_semantics = [#tpu.dimension_semantics<parallel>, #tpu.dimension_semantics<parallel>], iteration_bounds = array<i64: 2, 1>, scalar_prefetch = 0 : i64, scratch_operands = 0 : i64, tpu.core_type = #tpu.core_type<tc>, window_params = [{transform_indices = @transform_0, window_bounds = array<i64: 1, 4, 256>}, {transform_indices = @transform_1, window_bounds = array<i64: 1, 4, 256>}]} {
    %c0 = arith.constant 0 : index
    %c0_0 = arith.constant 0 : index
    %c0_1 = arith.constant 0 : index
    %0 = vector.load %arg2[%c0, %c0_0, %c0_1] : memref<1x4x256xf32, #tpu.memory_space<vmem>>, vector<1x4x256xf32>
    %1 = vector.shape_cast %0 : vector<1x4x256xf32> to vector<4x256xf32>
    %2 = arith.mulf %1, %1 : vector<4x256xf32>
    %cst = arith.constant 0.000000e+00 : f32
    %3 = vector.broadcast %cst : f32 to vector<2x256xf32>
    %4 = tpu.concatenate %3, %2, %3 in 0 : vector<2x256xf32>, vector<4x256xf32>, vector<2x256xf32> -> vector<8x256xf32>
    %5 = vector.extract_strided_slice %4 {offsets = [0, 0], sizes = [4, 256], strides = [1, 1]} : vector<8x256xf32> to vector<4x256xf32>
    %6 = vector.extract_strided_slice %4 {offsets = [1, 0], sizes = [4, 256], strides = [1, 1]} : vector<8x256xf32> to vector<4x256xf32>
    %7 = arith.addf %5, %6 : vector<4x256xf32>
    %8 = vector.extract_strided_slice %4 {offsets = [2, 0], sizes = [4, 256], strides = [1, 1]} : vector<8x256xf32> to vector<4x256xf32>
    %9 = arith.addf %7, %8 : vector<4x256xf32>
    %10 = vector.extract_strided_slice %4 {offsets = [3, 0], sizes = [4, 256], strides = [1, 1]} : vector<8x256xf32> to vector<4x256xf32>
    %11 = arith.addf %9, %10 : vector<4x256xf32>
    %12 = vector.extract_strided_slice %4 {offsets = [4, 0], sizes = [4, 256], strides = [1, 1]} : vector<8x256xf32> to vector<4x256xf32>
    %13 = arith.addf %11, %12 : vector<4x256xf32>
    %cst_2 = arith.constant 9.99999974E-5 : f32
    %14 = vector.broadcast %cst_2 : f32 to vector<4x256xf32>
    %15 = arith.mulf %14, %13 : vector<4x256xf32>
    %cst_3 = arith.constant 2.000000e+00 : f32
    %16 = vector.broadcast %cst_3 : f32 to vector<4x256xf32>
    %17 = arith.addf %16, %15 : vector<4x256xf32>
    %18 = math.rsqrt %17 : vector<4x256xf32>
    %19 = math.sqrt %18 : vector<4x256xf32>
    %20 = arith.mulf %18, %19 : vector<4x256xf32>
    %21 = arith.mulf %1, %20 : vector<4x256xf32>
    %c0_4 = arith.constant 0 : index
    %c0_5 = arith.constant 0 : index
    %c0_6 = arith.constant 0 : index
    %22 = vector.load %arg3[%c0_4, %c0_5, %c0_6] : memref<1x4x256xf32, #tpu.memory_space<vmem>>, vector<1x4x256xf32>
    %23 = vector.shape_cast %22 : vector<1x4x256xf32> to vector<4x256xf32>
    %24 = vector.shape_cast %21 : vector<4x256xf32> to vector<1x4x256xf32>
    tpu.vector_store %arg3[%c0_4, %c0_5, %c0_6], %24 {strides = array<i32>} : memref<1x4x256xf32, #tpu.memory_space<vmem>>, vector<1x4x256xf32>,
    return
  }
  func.func @transform_0(%arg0: i32, %arg1: i32) -> (i32, i32, i32) {
    %c0_i32 = arith.constant 0 : i32
    %c0_i32_0 = arith.constant 0 : i32
    return %arg0, %c0_i32, %arg1 : i32, i32, i32
  }
  func.func @transform_1(%arg0: i32, %arg1: i32) -> (i32, i32, i32) {
    %c0_i32 = arith.constant 0 : i32
    %c0_i32_0 = arith.constant 0 : i32
    return %arg0, %c0_i32, %arg1 : i32, i32, i32
  }
}

</mosaic_0001>

<bundles_post_ra>
// kernel: tpu_custom_call.1
= control target key start
LH: loop header
LB: loop body
LE: loop exit
PB: predicated region body
PF: predicated region fallthrough
CT: control target
= control target key end

     0   :  { %6 = vsyncpa [#allocation3], 0  ;;  %s669_s0 = inlined_call_operand.hbm [shape: f32[2,4,256], index: 0, kind: input, shape index: {}]   ;;  %s670_s1 = inlined_call_operand.hbm [shape: f32[2,4,256], index: 1, kind: output, shape index: {}]  }
   0x1   :  { %8 = vsyncpa [#allocation3 + $0x1], 0 }
   0x2   :  { %9 = vsyncpa [#allocation4], 0 }
   0x3   :  { %11 = vsyncpa [#allocation4 + $0x1], 0  ;;  %s531_s6 = smov 0   ;;  %s533_s7 = smov 0  }
   0x4   :  { %s535_s8 = smov 0   ;;  %s537_s9 = smov 0  }
   0x5   :  { %s539_s10 = smov 0   ;;  %s541_s11 = smov 0  }
   0x6 LB: > { %s322_s12 = sadd.s32 4294967295, %s517_s11   ;;  %s323_s13 = sadd.s32 4294967294, %s517_s11   ;;  %s517_s11 = sphi %s541_s11, %s17_s11   ;;  %s513_s10 = sphi %s539_s10, %s682_s10   ;;  %s509_s9 = sphi %s537_s9, %s681_s9   ;;  %s505_s8 = sphi %s535_s8, %s680_s8   ;;  %s501_s7 = sphi %s533_s7, %s679_s7   ;;  %s497_s6 = sphi %s531_s6, %s678_s6  }
   0x7   : > { %s29_s14 = sadd.s32 1, %s513_s10  ;;  %s38_s15 = sadd.s32 1, %s505_s8 }
   0x8   : > { %p31_p0 = scmp.ge.s32.totalorder %s29_s14, 2  ;;  %p45_p1 = scmp.ne.s32.totalorder %s505_s8, %s501_s7 }
   0x9   : > { %p46_p2 = scmp.eq.s32.totalorder %s517_s11, 0  ;;  %p51_p3 = scmp.ne.s32.totalorder %s501_s7, %s497_s6 }
   0xa   : > { %s684_s14 = smov (%p31_p0, %s29_s14), 0  ;;  %p52_p5 = scmp.eq.s32.totalorder %s322_s12, 0 }
   0xb   : > { %p572_p4 = por %p46_p2, %p45_p1  ;;  %s33_s17 = ssub.s32 %s513_s10, %s684_s14 }
   0xc   : > { %p77_p6 = scmp.eq.s32.totalorder %s322_s12, 1  ;;  %p36_p7 = scmp.eq.s32.totalorder %s33_s17, 0 }
   0xd   : > { %p578_p8 = por %p52_p5, %p51_p3  ;;  %p83_p10 = scmp.eq.s32.totalorder %s323_s13, 1 }
   0xe   : > { %p582_p9 = por %p77_p6, %p45_p1  ;;  %p351_p13 = scmp.lt.s32.totalorder %s517_s11, 2 }
   0xf   : > { %s587_s20 = scalar_select %p36_p7, %s505_s8, %s38_s15  }
  0x10   : > { %p589_p11 = por %p83_p10, %p51_p3  ;;  %s103_s22 = sand.u32 1, %s505_s8  }
  0x11   : > { %s326_s23 = sshll.u32 %s103_s22, 3  ;;  %s337_s24 = sshll.u32 %s513_s10, 7 }
  0x12   : > { %s674_s21 = scalar_select %p589_p11, 1, 0 }
  0x13   : > { %s115_s27 = scalar_lea.hbm %s669_s0, %s337_s24  ;;  %s107_s28 = scalar_lea.vmem [#allocation2], %s326_s23 }
  0x14   : > { %s117_s29 = sshll.u32 %s107_s28, 4  ;;  %p602_p0 = pnand %p351_p13, %p572_p4  ;;  %s118_s29 = int_to_ptr.vmem [resolvable:$true] %s117_s29 }
  0x15   : > { %p329_p1 = scmp.ge.s32.totalorder %s517_s11, 1  ;;  %p122_p2 = scmp.lt.s32.totalorder %s517_s11, 3 }
  0x16   : > { %s104_s2 = scalar_lea.sflag [#allocation3], %s103_s22  ;;  %p411_p3 = pneg %p602_p0 }
  0x17   : > { %s422_s3 = scalar_lea.vmem %s118_s29, 128  ;;  %s519_s4 = smov [#allocation2]  }
  0x18   : > { %p423_p5 = scmp.ne.s32.totalorder %s118_s29, %s422_s3  ;;  %s427_s5 = sshll.u32 %s519_s4, 4  ;;  %s428_s5 = int_to_ptr.vmem [resolvable:$false] %s427_s5 }
  0x19   : > { %s429_s12 = scalar_lea.vmem %s428_s5, 256  ;;  %p430_p10 = scmp.lt.s32.totalorder %s118_s29, %s428_s5 }
  0x1a   : > { %p425_p6 = pnand %p423_p5, %p411_p3  ;;  %p431_p12 = scmp.lt.s32.totalorder %s429_s12, %s422_s3 }
  0x1c   : > { %p426_p7 = pneg %p425_p6  ;;  %p432_p4 = por %p431_p12, %p430_p10 }
  0x1e   : > { %p433_p13 = pnand %p432_p4, %p426_p7 }
  0x20   : > { %436 = shalt.err (!%p433_p13)
}
  0x21   : > { %346 = dma.hbm_to_vmem [thread:$0]  (!%p602_p0), %s115_s27, 128, %s118_s29, %s104_s2  }
  0x22   : > { %p123_p11 = pnand %p329_p1, %p122_p2 }
  0x23   : > { %s617_s13 = sand.u32 (!%p123_p11), 1, %s501_s7  }
  0x24   : > { %126 = sbr.rel (%p123_p11) target bundleno = 116 (0x74), region = 24  ;;  %s330_s15 = sshll.u32 (!%p123_p11), %s617_s13, 3 }
  0x25   : > { %s129_s16 = scalar_lea.sflag (!%p123_p11), [#allocation3], %s617_s13  ;;  %s132_s17 = scalar_lea.vmem (!%p123_p11), [#allocation2], %s330_s15 }
  0x29   : > { %488 = dma.done.wait (%p578_p8), %s129_s16, 128  }
  0x2a   : > { %490 = vsyncadd (%p578_p8), %s129_s16, 4294967168  ;;  %v153_v0 = vld [vmem:[%s132_s17] sm:$0xff]  ;;  %vm161_vm0 = vcmask 1041408   ;;  %vm164_vm1 = vcmask 1045504   ;;  %s150_s18 = scalar_lea.vmem [#allocation5], %s330_s15  ;;  %s338_s23 = sshll.u32 %s509_s9, 7 }
  0x2b   : > { %v154_v1 = vmul.f32 %v153_v0, %v153_v0  ;;  %s238_s22 = sshll.u32 %s150_s18, 4  ;;  %s236_s26 = scalar_lea.hbm %s670_s1, %s338_s23  ;;  %s239_s22 = int_to_ptr.vmem [resolvable:$true] %s238_s22 }
  0x2c   : > { %s222_s27 = scalar_lea.sflag [#allocation4], %s617_s13  ;;  %s437_s28 = scalar_lea.vmem %s239_s22, 128 }
  0x2d   : > { %v156_v2 = vcombine.high %v154_v1, %v154_v1  ;;  %v157_v3 = vrot.slane %v154_v1, 6  ;;  %p438_p8 = scmp.ne.s32.totalorder %s239_s22, %s437_s28  ;;  %s520_s29 = smov [#allocation5]  }
  0x2e   : > { %s441_s30 = sshll.u32 %s520_s29, 4  ;;  %s442_s30 = int_to_ptr.vmem [resolvable:$false] %s441_s30 }
  0x2f   : > { %v158_v4 = vrot.slane %v156_v2, 6  ;;  %v162_v5 = vsel %vm161_vm0, 0.0, %v157_v3  ;;  %p439_p11 = pnand %p438_p8, %p582_p9  ;;  %s443_s2 = scalar_lea.vmem %s442_s30, 256 }
  0x30   : > { %v165_v6 = vsel %vm164_vm1, %v162_v5, 0.0  ;;  %p444_p0 = scmp.lt.s32.totalorder %s239_s22, %s442_s30  ;;  %p445_p1 = scmp.lt.s32.totalorder %s443_s2, %s437_s28 }
  0x31   : > { %v163_v7 = vsel %vm161_vm0, 0.0, %v158_v4  ;;  %v169_v8 = vrot.slane %v165_v6, 1  ;;  %v175_v9 = vrot.slane %v165_v6, 2  ;;  %v181_v14 = vrot.slane %v165_v6, 3  ;;  %p440_p12 = pneg %p439_p11 }
  0x32   : > { %v166_v10 = vsel %vm164_vm1, %v163_v7, 0.0  ;;  %v187_v18 = vrot.slane %v165_v6, 4  ;;  %p446_p2 = por %p445_p1, %p444_p0 }
  0x33   : > { %v170_v11 = vrot.slane %v166_v10, 1  ;;  %v173_v12 = vadd.f32 %v169_v8, %v165_v6  ;;  %v176_v13 = vrot.slane %v166_v10, 2  ;;  %v182_v17 = vrot.slane %v166_v10, 3 }
  0x34   : > { %v188_v21 = vrot.slane %v166_v10, 4  ;;  %p447_p3 = pnand %p446_p2, %p440_p12 }
  0x35   : > { %v174_v15 = vadd.f32 %v170_v11, %v166_v10  ;;  %v179_v16 = vadd.f32 %v175_v9, %v173_v12 }
  0x37   : > { %v180_v19 = vadd.f32 %v176_v13, %v174_v15  ;;  %v185_v20 = vadd.f32 %v181_v14, %v179_v16 }
  0x39   : > { %v186_v22 = vadd.f32 %v182_v17, %v180_v19  ;;  %v191_v23 = vadd.f32 %v187_v18, %v185_v20 }
  0x3b   : > { %v192_v24 = vadd.f32 %v188_v21, %v186_v22  ;;  %v193_v25 = vmul.f32 0.0001, %v191_v23 }
  0x3d   : > { %v194_v26 = vmul.f32 0.0001, %v192_v24  ;;  %v195_v27 = vadd.f32 2.0, %v193_v25 }
  0x3f   : > { %v196_v28 = vadd.f32 2.0, %v194_v26  ;;  %401 = vrsqrt.f32 %v195_v27 }
  0x41   : > { %403 = vrsqrt.f32 %v196_v28 }
  0x4c   : > { %v402_v29 = vpop.eup %401 }
  0x4d   : > { %405 = vrsqrt.f32 %v402_v29  ;;  %vm201_vm2 = vcmp.eq.f32.partialorder %v402_v29, inf  ;;  %v204_v32 = vand.u32 2147483648, %v402_v29  ;;  %vm203_vm3 = vcmp.eq.f32.partialorder %v402_v29, 0.0 }
  0x4e   : > { %v404_v30 = vpop.eup %403 }
  0x4f   : > { %407 = vrsqrt.f32 %v404_v30  ;;  %vm208_vm4 = vcmp.eq.f32.partialorder %v404_v30, inf  ;;  %v211_v35 = vand.u32 2147483648, %v404_v30  ;;  %vm210_vm5 = vcmp.eq.f32.partialorder %v404_v30, 0.0 }
  0x5a   : > { %v406_v31 = vpop.eup %405 }
  0x5b   : > { %v200_v33 = vmul.f32 %v406_v31, %v402_v29 }
  0x5c   : > { %v408_v34 = vpop.eup %407 }
  0x5d   : > { %v202_v36 = vsel %vm201_vm2, %v402_v29, %v200_v33  ;;  %v207_v37 = vmul.f32 %v408_v34, %v404_v30 }
  0x5e   : > { %v205_v38 = vsel %vm203_vm3, %v204_v32, %v202_v36 }
  0x5f   : > { %v209_v39 = vsel %vm208_vm4, %v404_v30, %v207_v37  ;;  %v213_v40 = vmul.f32 %v402_v29, %v205_v38 }
  0x60   : > { %v212_v41 = vsel %vm210_vm5, %v211_v35, %v209_v39 }
  0x61   : > { %v214_v42 = vmul.f32 %v404_v30, %v212_v41 }
  0x63   : > { %v217_v43 = vcombine.low %v213_v40, %v214_v42 }
  0x65   : > { %v219_v44 = vmul.f32 %v217_v43, %v153_v0 }
  0x67   : > { %220 = vst [vmem:[%s150_s18] sm:$0xff] %v219_v44 }
  0x68   : > { %450 = shalt.err (!%p447_p3)
}
  0x69   : > { %s451_s9 = scalar_lea.hbm %s236_s26, 128  ;;  %s455_s5 = scalar_lea.hbm %s670_s1, 256 }
  0x6a   : > { %p452_p5 = scmp.ne.s32.totalorder %s236_s26, %s451_s9  ;;  %p456_p10 = scmp.lt.s32.totalorder %s236_s26, %s670_s1 }
  0x6b   : > { %p457_p4 = scmp.lt.s32.totalorder %s455_s5, %s451_s9 }
  0x6c   : > { %p453_p6 = pnand %p452_p5, %p582_p9 }
  0x6d   : > { %p458_p13 = por %p457_p4, %p456_p10 }
  0x6e   : > { %p454_p7 = pneg %p453_p6 }
  0x70   : > { %p459_p8 = pnand %p458_p13, %p454_p7 }
  0x72   : > { %462 = shalt.err (!%p459_p8)
}
  0x73   : > { %341 = dma.vmem_to_hbm [thread:$0]  (%p582_p9), %s239_s22, 128, %s236_s26, %s222_s27  }
  0x74 PF: > { %s250_s15 = sand.u32 1, %s497_s6   ;;  %p676_p11 = scmp.ne.s32.totalorder %s674_s21, 0 }
  0x75   : > { %p677_p12 = scmp.ge.s32.totalorder %s517_s11, 2  ;;  %s251_s16 = scalar_lea.sflag [#allocation4], %s250_s15 }
  0x77   : > { %p348_p0 = pnand %p677_p12, %p676_p11 }
  0x79   : > { %p349_p1 = pneg %p348_p0 }
  0x7b   : > { %492 = dma.done.wait (%p349_p1), %s251_s16, 128  }
  0x7c   : > { %494 = vsyncadd (%p349_p1), %s251_s16, 4294967168  ;;  %s17_s11 = sadd.s32 1, %s517_s11   ;;  %s678_s6 = smov %s501_s7 }
  0x7d   : > { %p14_p2 = scmp.ge.s32.totalorder %s17_s11, 4   ;;  %s679_s7 = smov %s505_s8 }
  0x7e   : > { %s680_s8 = smov %s587_s20  ;;  %s681_s9 = smov %s513_s10 }
  0x7f   : > { %s682_s10 = smov %s684_s14  ;;  %16 = sbr.rel (!%p14_p2) target bundleno = 6 (0x6), region = 69 }
  0x84   :  { %256 = vsyncpa [#allocation3], 1 }
  0x85   :  { %258 = vsyncpa [#allocation3 + $0x1], 1 }
  0x86   :  { %259 = vsyncpa [#allocation4], 1 }
  0x87   :  { %261 = vsyncpa [#allocation4 + $0x1], 1 }

</bundles_post_ra>
